<compile_context>
chip_gen: v7x
topology: tpu7x:2x2x1
jax: 0.10.0
libtpu: 0.0.40
codegen_flags: <defaults>
</compile_context>

<pallas_src>
import math
import functools

import jax
import jax.numpy as jnp
from jax.experimental import pallas as pl
from jax.experimental.pallas import tpu as pltpu

EPS = 1e-5                       # nn.LayerNorm default
_SQRT_HALF = 0.7071067811865476
_VMEM_LIMIT = 32 * 1024 * 1024   # explicit scoped-VMEM budget (safe on v5e/v6e/v7x)


def _round_up(x, m):
    return ((x + m - 1) // m) * m


def _cparams():
    # "parallel" lets v7x's two TensorCores split the grid; harmless on v5e/v6e.
    return pltpu.CompilerParams(
        dimension_semantics=("parallel",),
        vmem_limit_bytes=_VMEM_LIMIT,
    )


# ------------------------------ in-kernel helpers ------------------------------

def _ln(x, g, b):
    """Row-wise LayerNorm in f32.  x: [M, C], g/b: [1, C]."""
    x = x.astype(jnp.float32)
    mu = jnp.mean(x, axis=-1, keepdims=True)
    var = jnp.mean((x - mu) ** 2, axis=-1, keepdims=True)
    return (x - mu) * jax.lax.rsqrt(var + EPS) * g + b


def _erf(z):
    # Rational approximation of erf (Abramowitz & Stegun 7.1.26), |err| <= 1.5e-7
    # (i.e. f32 resolution), built only from exp/abs so it lowers cleanly in Mosaic.
    # TODO(synk): switch to jax.lax.erf once its Mosaic lowering is guaranteed.
    a1, a2, a3, a4, a5 = 0.254829592, -0.284496736, 1.421413741, -1.453152027, 1.061405429
    p = 0.3275911
    s = jnp.sign(z)
    a = jnp.abs(z)
    t = 1.0 / (1.0 + p * a)
    poly = ((((a5 * t + a4) * t + a3) * t + a2) * t + a1) * t
    return s * (1.0 - poly * jnp.exp(-a * a))


def _gelu(x):
    # exact (erf-based) GELU, matching nn.GELU()
    return 0.5 * x * (1.0 + _erf(x * _SQRT_HALF))


# ----------------------------- Pallas kernel bodies ----------------------------

def _ln_q_kv_kernel(x_ref, g_ref, b_ref, qw_ref, qb_ref, kvw_ref, kvb_ref,
                    q_ref, kv_ref):
    """norm1 + q-proj + kv-proj (sr_ratio == 1 path); row tile of tokens."""
    xn = _ln(x_ref[...], g_ref[...], b_ref[...])
    q_ref[...] = (jnp.dot(xn, qw_ref[...], preferred_element_type=jnp.float32)
                  + qb_ref[...]).astype(q_ref.dtype)
    kv_ref[...] = (jnp.dot(xn, kvw_ref[...], preferred_element_type=jnp.float32)
                   + kvb_ref[...]).astype(kv_ref.dtype)


def _ln_q_xn_kernel(x_ref, g_ref, b_ref, qw_ref, qb_ref, xn_ref, q_ref):
    """norm1 + q-proj, also emits norm1(x) for the sr/kv path (sr_ratio > 1)."""
    xn = _ln(x_ref[...], g_ref[...], b_ref[...])
    xn_ref[...] = xn.astype(xn_ref.dtype)
    q_ref[...] = (jnp.dot(xn, qw_ref[...], preferred_element_type=jnp.float32)
                  + qb_ref[...]).astype(q_ref.dtype)


def _ln_fc1_kernel(x_ref, g_ref, b_ref, w_ref, b1_ref, h_ref):
    """norm2 + fc1; row tile of tokens."""
    xn = _ln(x_ref[...], g_ref[...], b_ref[...])
    h_ref[...] = (jnp.dot(xn, w_ref[...], preferred_element_type=jnp.float32)
                  + b1_ref[...]).astype(h_ref.dtype)


def _sr_kv_kernel(p_ref, g_ref, srw_ref, srb_ref, sg_ref, sb_ref,
                  kvw_ref, kvb_ref, kv_ref, *, has_global):
    """sr conv (as patch matmul) -> LayerNorm -> kv-proj; global-token kv fused in."""
    # p_ref: (1, S, sr*sr*C) space-to-depth patches of norm1(x) spatial tokens
    # g_ref: (1, 1, C) normalized global token (ignored when has_global=False)
    s = (jnp.dot(p_ref[0], srw_ref[...], preferred_element_type=jnp.float32)
         + srb_ref[...])
    s = _ln(s, sg_ref[...], sb_ref[...])
    kv_p = (jnp.dot(s, kvw_ref[...], preferred_element_type=jnp.float32)
            + kvb_ref[...])
    if has_global:
        kv_g = (jnp.dot(g_ref[0], kvw_ref[...], preferred_element_type=jnp.float32)
                + kvb_ref[...])
        kv = jnp.concatenate([kv_g, kv_p], axis=0)        # global token first
    else:
        kv = kv_p
    kv_ref[0] = kv.astype(kv_ref.dtype)


def _attn_proj_res_kernel(q_ref, kv_ref, x_ref, pw_ref, pb_ref,
                          y_ref, w_ref, *, num_heads, scale):
    """All heads of one batch element: QK^T softmax, AV, out-proj, residual add."""
    N, C = q_ref.shape[1], q_ref.shape[2]
    hd = C // num_heads
    q = q_ref[0].astype(jnp.float32)           # (N, C)
    kv = kv_ref[0].astype(jnp.float32)         # (L, 2C)  -- [k(all heads) | v(all heads)]
    acc = x_ref[0].astype(jnp.float32) + pb_ref[...]       # residual + proj bias
    for h in range(num_heads):                 # static unroll: all heads in one grid step
        lo = h * hd
        qh = q[:, lo:lo + hd]
        kh = kv[:, lo:lo + hd]
        vh = kv[:, C + lo:C + lo + hd]
        s = jax.lax.dot_general(qh, kh, (((1,), (1,)), ((), ())),
                                preferred_element_type=jnp.float32) * scale   # (N, L)
        m = jnp.max(s, axis=-1, keepdims=True)
        e = jnp.exp(s - m)
        p = e / jnp.sum(e, axis=-1, keepdims=True)
        w_ref[0, h] = p.astype(w_ref.dtype)
        o = jnp.dot(p, vh, preferred_element_type=jnp.float32)                # (N, hd)
        # proj(concat_h o_h) == sum_h o_h @ proj_w[h*hd:(h+1)*hd, :]
        acc = acc + jnp.dot(o, pw_ref[lo:lo + hd, :],
                            preferred_element_type=jnp.float32)
    y_ref[0] = acc.astype(y_ref.dtype)


def _dw_gelu_fc2_res_kernel(h_ref, x_ref, dw_ref, dwb_ref, w2_ref, b2_ref, o_ref,
                            *, H, W):
    """Depthwise 3x3 conv (zero pad via masks) + GELU + fc2 + residual, per batch."""
    N, C = o_ref.shape[1], o_ref.shape[2]
    HW = H * W
    h = h_ref[0].astype(jnp.float32)           # (N, C)
    hs = h[0:HW, :]                            # reference quirk: first H*W tokens spatial
    dw = dw_ref[...]                           # (9, C) depthwise taps

    # Zero padding along the row (height) direction done with a zero-extended copy;
    # column (width) wrap-around handled with a lane mask.  No HBM pad, no scratch.
    R = _round_up(W + 1, 8)                    # static
    z = jnp.zeros((R, C), jnp.float32)
    hp = jnp.concatenate([z, hs, z], axis=0)   # (HW + 2R, C)

    tok = jax.lax.broadcasted_iota(jnp.int32, (HW, C), 0)
    row = tok // W
    col = tok - row * W

    acc = jnp.zeros((HW, C), jnp.float32)
    for dy in (-1, 0, 1):
        for dx in (-1, 0, 1):
            shift = dy * W + dx
            src = hp[R + shift:R + shift + HW, :]          # token t -> token t + shift
            ok = (col + dx >= 0) & (col + dx < W)          # row bounds via zero padding
            idx = (dy + 1) * 3 + (dx + 1)
            acc = acc + jnp.where(ok, src, 0.0) * dw[idx:idx + 1, :]
    conv = acc + dwb_ref[...]

    y_sp = (jnp.dot(_gelu(conv), w2_ref[...], preferred_element_type=jnp.float32)
            + b2_ref[...])
    o_ref[0, 0:HW, :] = (x_ref[0, 0:HW, :].astype(jnp.float32) + y_sp).astype(o_ref.dtype)

    if N > HW:  # depth token(s) bypass the conv but still pass through GELU + fc2
        y_d = (jnp.dot(_gelu(h[HW:N, :]), w2_ref[...],
                       preferred_element_type=jnp.float32) + b2_ref[...])
        o_ref[0, HW:N, :] = (x_ref[0, HW:N, :].astype(jnp.float32)
                             + y_d).astype(o_ref.dtype)


# ------------------------------- kernel launchers -------------------------------

def _rowwise_call(kernel, x2d, consts, out_dims, *, flops=0, transcend=0):
    """Row-tiled launch: x2d [M, K] tiled over rows; `consts` (all 2-D weights/biases)
    resident whole in VMEM; outputs are [M, d] for d in out_dims."""
    M, K = x2d.shape
    TM = min(512, _round_up(M, 8))
    row_spec = lambda d: pl.BlockSpec((TM, d), lambda i: (i, 0))
    in_specs = [row_spec(K)] + [pl.BlockSpec(c.shape, lambda i: (0, 0)) for c in consts]
    out_specs = tuple(row_spec(d) for d in out_dims)
    out_shape = tuple(jax.ShapeDtypeStruct((M, d), jnp.float32) for d in out_dims)
    bytes_acc = 4 * (x2d.size + sum(int(c.size) for c in consts)
                     + sum(M * d for d in out_dims))
    return pl.pallas_call(
        kernel,
        grid=(pl.cdiv(M, TM),),
        in_specs=in_specs,
        out_specs=out_specs,
        out_shape=out_shape,
        compiler_params=_cparams(),
        cost_estimate=pl.CostEstimate(flops=int(flops), transcendentals=int(transcend),
                                      bytes_accessed=int(bytes_acc)),
    )(x2d, *consts)


# ------------------------------ Block forward ------------------------------

def block_forward(params, x, H, W):
    B, N, C = x.shape
    nh = params["num_heads"]
    sr = params["sr_ratio"]
    scale = params["scale"]
    HW = H * W
    has_global = (N == HW + 1)
    M = B * N
    x2d = x.reshape(M, C)

    g1 = params["norm1_g"].reshape(1, C)
    b1 = params["norm1_b"].reshape(1, C)
    qw, qb = params["q_w"], params["q_b"].reshape(1, C)
    kvw, kvb = params["kv_w"], params["kv_b"].reshape(1, 2 * C)

    # ---- K1: norm1 + q (+ kv when sr == 1) ----
    if sr > 1:
        xn2d, q2d = _rowwise_call(
            _ln_q_xn_kernel, x2d, [g1, b1, qw, qb], [C, C],
            flops=2 * M * C * C + 10 * M * C)
        xn3 = xn2d.reshape(B, N, C)

        # ---- K2: sr conv + srnorm + kv (global token kv fused in) ----
        pt = xn3[:, 1:, :] if has_global else xn3        # spatial tokens of norm1(x)
        Hs, Ws = H // sr, W // sr
        S = Hs * Ws
        P = sr * sr * C
        # Conv2d(k=sr, stride=sr) == space-to-depth + matmul.
        # TODO(synk): express this gather via the BlockSpec index_map of the sr kernel
        #             instead of an XLA reshape/transpose round-trip.
        patches = pt.reshape(B, Hs, sr, Ws, sr, C).transpose(0, 1, 3, 2, 4, 5)
        patches = patches.reshape(B, S, P)
        gtok = xn3[:, 0:1, :]                            # ignored when has_global=False
        L = S + (1 if has_global else 0)
        kern_sr = functools.partial(_sr_kv_kernel, has_global=has_global)
        kv3 = pl.pallas_call(
            kern_sr,
            grid=(B,),
            in_specs=[
                pl.BlockSpec((1, S, P), lambda b: (b, 0, 0)),
                pl.BlockSpec((1, 1, C), lambda b: (b, 0, 0)),
                pl.BlockSpec((P, C), lambda b: (0, 0)),
                pl.BlockSpec((1, C), lambda b: (0, 0)),
                pl.BlockSpec((1, C), lambda b: (0, 0)),
                pl.BlockSpec((1, C), lambda b: (0, 0)),
                pl.BlockSpec((C, 2 * C), lambda b: (0, 0)),
                pl.BlockSpec((1, 2 * C), lambda b: (0, 0)),
            ],
            out_specs=pl.BlockSpec((1, L, 2 * C), lambda b: (b, 0, 0)),
            out_shape=jax.ShapeDtypeStruct((B, L, 2 * C), jnp.float32),
            compiler_params=_cparams(),
            cost_estimate=pl.CostEstimate(
                flops=2 * B * (S * P * C + L * C * 2 * C), transcendentals=0,
                bytes_accessed=4 * (B * S * P + B * L * 2 * C + P * C + 2 * C * C)),
        )(patches, gtok,
          params["sr_w"], params["sr_b"].reshape(1, C),
          params["srnorm_g"].reshape(1, C), params["srnorm_b"].reshape(1, C),
          kvw, kvb)
    else:
        q2d, kv2d = _rowwise_call(
            _ln_q_kv_kernel, x2d, [g1, b1, qw, qb, kvw, kvb], [C, 2 * C],
            flops=2 * M * C * 3 * C + 10 * M * C)
        kv3 = kv2d.reshape(B, N, 2 * C)
        L = N

    q3 = q2d.reshape(B, N, C)

    # ---- K3: attention (all heads) + proj + residual add ----
    pw, pb = params["proj_w"], params["proj_b"].reshape(1, C)
    kern_attn = functools.partial(_attn_proj_res_kernel, num_heads=nh, scale=scale)
    y, attn_w = pl.pallas_call(
        kern_attn,
        grid=(B,),
        in_specs=[
            pl.BlockSpec((1, N, C), lambda b: (b, 0, 0)),
            pl.BlockSpec((1, L, 2 * C), lambda b: (b, 0, 0)),
            pl.BlockSpec((1, N, C), lambda b: (b, 0, 0)),
            pl.BlockSpec((C, C), lambda b: (0, 0)),
            pl.BlockSpec((1, C), lambda b: (0, 0)),
        ],
        out_specs=(
            pl.BlockSpec((1, N, C), lambda b: (b, 0, 0)),
            pl.BlockSpec((1, nh, N, L), lambda b: (b, 0, 0, 0)),
        ),
        out_shape=(
            jax.ShapeDtypeStruct((B, N, C), jnp.float32),
            jax.ShapeDtypeStruct((B, nh, N, L), jnp.float32),
        ),
        compiler_params=_cparams(),
        cost_estimate=pl.CostEstimate(
            flops=B * (4 * N * L * C + 2 * N * C * C),
            transcendentals=B * nh * N * L,
            bytes_accessed=4 * (3 * B * N * C + B * L * 2 * C + B * nh * N * L + C * C)),
    )(q3, kv3, x, pw, pb)

    # ---- K4: norm2 + fc1 ----
    y2d = y.reshape(M, C)
    h2d = _rowwise_call(
        _ln_fc1_kernel, y2d,
        [params["norm2_g"].reshape(1, C), params["norm2_b"].reshape(1, C),
         params["fc1_w"], params["fc1_b"].reshape(1, C)],
        [C], flops=2 * M * C * C + 10 * M * C)[0]
    h3 = h2d.reshape(B, N, C)

    # ---- K5: dwconv + GELU + fc2 + residual add ----
    kern_tail = functools.partial(_dw_gelu_fc2_res_kernel, H=H, W=W)
    out = pl.pallas_call(
        kern_tail,
        grid=(B,),
        in_specs=[
            pl.BlockSpec((1, N, C), lambda b: (b, 0, 0)),
            pl.BlockSpec((1, N, C), lambda b: (b, 0, 0)),
            pl.BlockSpec((9, C), lambda b: (0, 0)),
            pl.BlockSpec((1, C), lambda b: (0, 0)),
            pl.BlockSpec((C, C), lambda b: (0, 0)),
            pl.BlockSpec((1, C), lambda b: (0, 0)),
        ],
        out_specs=pl.BlockSpec((1, N, C), lambda b: (b, 0, 0)),
        out_shape=jax.ShapeDtypeStruct((B, N, C), jnp.float32),
        compiler_params=_cparams(),
        cost_estimate=pl.CostEstimate(
            flops=B * (18 * HW * C + 2 * N * C * C),
            transcendentals=B * N * C,
            bytes_accessed=4 * (3 * B * N * C + 9 * C + 2 * C + C * C)),
    )(h3, y, params["dw_w"].reshape(9, C), params["dw_b"].reshape(1, C),
      params["fc2_w"], params["fc2_b"].reshape(1, C))

    return out, attn_w


# ------------------------------ parameter init -----------------------------

def init_params(key, dim, num_heads, sr_ratio):
    ks = jax.random.split(key, 8)

    def nrm(k, shape, std):
        return (std * jax.random.normal(k, shape)).astype(jnp.float32)

    hd = dim // num_heads
    p = dict(
        num_heads=num_heads,
        sr_ratio=sr_ratio,
        scale=hd ** (-0.5),
        norm1_g=jnp.ones((dim,), jnp.float32), norm1_b=jnp.zeros((dim,), jnp.float32),
        q_w=nrm(ks[0], (dim, dim), 0.02), q_b=jnp.zeros((dim,), jnp.float32),
        kv_w=nrm(ks[1], (dim, 2 * dim), 0.02), kv_b=jnp.zeros((2 * dim,), jnp.float32),
        proj_w=nrm(ks[2], (dim, dim), 0.02), proj_b=jnp.zeros((dim,), jnp.float32),
        norm2_g=jnp.ones((dim,), jnp.float32), norm2_b=jnp.zeros((dim,), jnp.float32),
        # MixFFN quirk: hidden == in_features == dim
        fc1_w=nrm(ks[3], (dim, dim), 0.02), fc1_b=jnp.zeros((dim,), jnp.float32),
        fc2_w=nrm(ks[4], (dim, dim), 0.02), fc2_b=jnp.zeros((dim,), jnp.float32),
        # depthwise conv: torch weight [C,1,3,3] stored here as [3,3,C]; fan_out = 9
        dw_w=nrm(ks[5], (3, 3, dim), math.sqrt(2.0 / 9.0)),
        dw_b=jnp.zeros((dim,), jnp.float32),
    )
    if sr_ratio > 1:
        fan_out = sr_ratio * sr_ratio * dim
        # torch weight [C, C, sr, sr] stored as matmul matrix [(sr*sr*C), C]
        p["sr_w"] = nrm(ks[6], (sr_ratio * sr_ratio * dim, dim), math.sqrt(2.0 / fan_out))
        p["sr_b"] = jnp.zeros((dim,), jnp.float32)
        p["srnorm_g"] = jnp.ones((dim,), jnp.float32)
        p["srnorm_b"] = jnp.zeros((dim,), jnp.float32)
    return p


# ------------------------------------ main ----------------------------------

if __name__ == "__main__":
    B, dim, num_heads, H, W, sr_ratio = 2, 32, 2, 8, 8, 2
    N = H * W + 1  # H*W patch tokens + 1 global token

    key = jax.random.PRNGKey(0)
    kx, kp = jax.random.split(key)
    x = jax.random.normal(kx, (B, N, dim), jnp.float32)
    params = init_params(kp, dim, num_heads, sr_ratio)

    out, attn_w = block_forward(params, x, H, W)
    jax.block_until_ready(out)
    jax.block_until_ready(attn_w)

    L = (H // sr_ratio) * (W // sr_ratio) + 1
    assert out.shape == (B, N, dim)
    assert attn_w.shape == (B, num_heads, N, L)
    assert bool(jnp.isfinite(out).all()) and bool(jnp.isfinite(attn_w).all())
    print("KERNEL_OK")
</pallas_src>

<mosaic_0001>
module attributes {stable_mosaic.version = 11 : i64} {
  func.func @_ln_q_xn_kernel(%arg0: i32, %arg1: memref<136x32xf32, #tpu.memory_space<vmem>>, %arg2: memref<1x32xf32, #tpu.memory_space<vmem>>, %arg3: memref<1x32xf32, #tpu.memory_space<vmem>>, %arg4: memref<32x32xf32, #tpu.memory_space<vmem>>, %arg5: memref<1x32xf32, #tpu.memory_space<vmem>>, %arg6: memref<136x32xf32, #tpu.memory_space<vmem>>, %arg7: memref<136x32xf32, #tpu.memory_space<vmem>>) attributes {dimension_semantics = [#tpu.dimension_semantics<parallel>], iteration_bounds = array<i64: 1>, scalar_prefetch = 0 : i64, scratch_operands = 0 : i64, tpu.core_type = #tpu.core_type<tc>, window_params = [{transform_indices = @transform_0, window_bounds = array<i64: 136, 32>}, {pipeline_mode = #tpu.pipeline_mode<synchronous>, transform_indices = @transform_1, window_bounds = array<i64: 1, 32>}, {pipeline_mode = #tpu.pipeline_mode<synchronous>, transform_indices = @transform_2, window_bounds = array<i64: 1, 32>}, {pipeline_mode = #tpu.pipeline_mode<synchronous>, transform_indices = @transform_3, window_bounds = array<i64: 32, 32>}, {pipeline_mode = #tpu.pipeline_mode<synchronous>, transform_indices = @transform_4, window_bounds = array<i64: 1, 32>}, {transform_indices = @transform_5, window_bounds = array<i64: 136, 32>}, {transform_indices = @transform_6, window_bounds = array<i64: 136, 32>}]} {
    %c0 = arith.constant 0 : index
    %c0_0 = arith.constant 0 : index
    %0 = vector.load %arg1[%c0, %c0_0] : memref<136x32xf32, #tpu.memory_space<vmem>>, vector<136x32xf32>
    %c0_1 = arith.constant 0 : index
    %c0_2 = arith.constant 0 : index
    %1 = vector.load %arg2[%c0_1, %c0_2] : memref<1x32xf32, #tpu.memory_space<vmem>>, vector<1x32xf32>
    %c0_3 = arith.constant 0 : index
    %c0_4 = arith.constant 0 : index
    %2 = vector.load %arg3[%c0_3, %c0_4] : memref<1x32xf32, #tpu.memory_space<vmem>>, vector<1x32xf32>
    %cst = arith.constant dense<0.000000e+00> : vector<136xf32>
    %3 = vector.multi_reduction <add>, %0, %cst [1] : vector<136x32xf32> to vector<136xf32>
    %4 = vector.shape_cast %3 : vector<136xf32> to vector<136x1xf32>
    %cst_5 = arith.constant 3.200000e+01 : f32
    %5 = vector.broadcast %cst_5 : f32 to vector<136x1xf32>
    %6 = arith.divf %4, %5 : vector<136x1xf32>
    %7 = vector.broadcast %6 : vector<136x1xf32> to vector<136x32xf32>
    %8 = arith.subf %0, %7 : vector<136x32xf32>
    %9 = arith.mulf %8, %8 : vector<136x32xf32>
    %cst_6 = arith.constant dense<0.000000e+00> : vector<136xf32>
    %10 = vector.multi_reduction <add>, %9, %cst_6 [1] : vector<136x32xf32> to vector<136xf32>
    %11 = vector.shape_cast %10 : vector<136xf32> to vector<136x1xf32>
    %cst_7 = arith.constant 3.200000e+01 : f32
    %12 = vector.broadcast %cst_7 : f32 to vector<136x1xf32>
    %13 = arith.divf %11, %12 : vector<136x1xf32>
    %14 = vector.broadcast %6 : vector<136x1xf32> to vector<136x32xf32>
    %15 = arith.subf %0, %14 : vector<136x32xf32>
    %cst_8 = arith.constant 9.99999974E-6 : f32
    %16 = vector.broadcast %cst_8 : f32 to vector<136x1xf32>
    %17 = arith.addf %13, %16 : vector<136x1xf32>
    %18 = math.rsqrt %17 : vector<136x1xf32>
    %19 = vector.broadcast %18 : vector<136x1xf32> to vector<136x32xf32>
    %20 = arith.mulf %15, %19 : vector<136x32xf32>
    %21 = vector.broadcast %1 : vector<1x32xf32> to vector<136x32xf32>
    %22 = arith.mulf %20, %21 : vector<136x32xf32>
    %23 = vector.broadcast %2 : vector<1x32xf32> to vector<136x32xf32>
    %24 = arith.addf %22, %23 : vector<136x32xf32>
    %c0_9 = arith.constant 0 : index
    %c0_10 = arith.constant 0 : index
    %25 = vector.load %arg6[%c0_9, %c0_10] : memref<136x32xf32, #tpu.memory_space<vmem>>, vector<136x32xf32>
    tpu.vector_store %arg6[%c0_9, %c0_10], %24 {strides = array<i32>} : memref<136x32xf32, #tpu.memory_space<vmem>>, vector<136x32xf32>,
    %c0_11 = arith.constant 0 : index
    %c0_12 = arith.constant 0 : index
    %26 = vector.load %arg4[%c0_11, %c0_12] : memref<32x32xf32, #tpu.memory_space<vmem>>, vector<32x32xf32>
    %cst_13 = arith.constant dense<0.000000e+00> : vector<136x32xf32>
    %27 = tpu.matmul %24, %26, %cst_13 {dimension_numbers = #tpu.dot_dimension_numbers<[1], [0], [0], [1], [0, 0, 1, 1], [], []>} : vector<136x32xf32>, vector<32x32xf32>, vector<136x32xf32> -> vector<136x32xf32>
    %c0_14 = arith.constant 0 : index
    %c0_15 = arith.constant 0 : index
    %28 = vector.load %arg5[%c0_14, %c0_15] : memref<1x32xf32, #tpu.memory_space<vmem>>, vector<1x32xf32>
    %29 = vector.broadcast %28 : vector<1x32xf32> to vector<136x32xf32>
    %30 = arith.addf %27, %29 : vector<136x32xf32>
    %c0_16 = arith.constant 0 : index
    %c0_17 = arith.constant 0 : index
    %31 = vector.load %arg7[%c0_16, %c0_17] : memref<136x32xf32, #tpu.memory_space<vmem>>, vector<136x32xf32>
    tpu.vector_store %arg7[%c0_16, %c0_17], %30 {strides = array<i32>} : memref<136x32xf32, #tpu.memory_space<vmem>>, vector<136x32xf32>,
    return
  }
  func.func @transform_0(%arg0: i32) -> (i32, i32) {
    %c0_i32 = arith.constant 0 : i32
    %c0_i32_0 = arith.constant 0 : i32
    return %arg0, %c0_i32 : i32, i32
  }
  func.func @transform_1(%arg0: i32) -> (i32, i32) {
    %c0_i32 = arith.constant 0 : i32
    %c0_i32_0 = arith.constant 0 : i32
    %c0_i32_1 = arith.constant 0 : i32
    return %c0_i32, %c0_i32_0 : i32, i32
  }
  func.func @transform_2(%arg0: i32) -> (i32, i32) {
    %c0_i32 = arith.constant 0 : i32
    %c0_i32_0 = arith.constant 0 : i32
    %c0_i32_1 = arith.constant 0 : i32
    return %c0_i32, %c0_i32_0 : i32, i32
  }
  func.func @transform_3(%arg0: i32) -> (i32, i32) {
    %c0_i32 = arith.constant 0 : i32
    %c0_i32_0 = arith.constant 0 : i32
    %c0_i32_1 = arith.constant 0 : i32
    return %c0_i32, %c0_i32_0 : i32, i32
  }
  func.func @transform_4(%arg0: i32) -> (i32, i32) {
    %c0_i32 = arith.constant 0 : i32
    %c0_i32_0 = arith.constant 0 : i32
    %c0_i32_1 = arith.constant 0 : i32
    return %c0_i32, %c0_i32_0 : i32, i32
  }
  func.func @transform_5(%arg0: i32) -> (i32, i32) {
    %c0_i32 = arith.constant 0 : i32
    %c0_i32_0 = arith.constant 0 : i32
    return %arg0, %c0_i32 : i32, i32
  }
  func.func @transform_6(%arg0: i32) -> (i32, i32) {
    %c0_i32 = arith.constant 0 : i32
    %c0_i32_0 = arith.constant 0 : i32
    return %arg0, %c0_i32 : i32, i32
  }
}

</mosaic_0001>

<bundles_post_ra>
// kernel: tpu_custom_call.1
= control target key start
LH: loop header
LB: loop body
LE: loop exit
PB: predicated region body
PF: predicated region fallthrough
CT: control target
= control target key end

     0   :  { %vm41_vm0 = vcmask 261120   ;;  %vm712_vm1 = vmmov 0   ;;  %s1236_s0 = inlined_call_operand.vmem [shape: f32[130,32], index: 0, kind: input, shape index: {}]   ;;  %s1237_s3 = inlined_call_operand.vmem [shape: f32[32,32], index: 3, kind: input, shape index: {}]   ;;  %s1238_s1 = inlined_call_operand.vmem [shape: f32[1,32], index: 1, kind: input, shape index: {}]   ;;  %s1239_s2 = inlined_call_operand.vmem [shape: f32[1,32], index: 2, kind: input, shape index: {}]   ;;  %s1240_s5 = inlined_call_operand.vmem [shape: f32[130,32], index: 5, kind: output, shape index: {0}]   ;;  %s1241_s4 = inlined_call_operand.vmem [shape: f32[1,32], index: 4, kind: input, shape index: {}]   ;;  %s1242_s6 = inlined_call_operand.vmem [shape: f32[130,32], index: 6, kind: output, shape index: {1}]  }
   0x1   :  { %v22_v0 = vld [vmem:[%s1236_s0] sm:$0xff]  ;;  %v31_v1 = vld [vmem:[%s1236_s0 + $0x48] sm:$0xff]  ;;  %v24_v5 = vld [vmem:[%s1236_s0 + $0x10] sm:$0xff] }
   0x2   :  { %v23_v2 = vld [vmem:[%s1236_s0 + $0x8] sm:$0xff]  ;;  %v42_v3 = vsel %vm41_vm0, %v22_v0, 0.0  ;;  %v69_v4 = vsel %vm41_vm0, %v31_v1, 0.0  ;;  %v48_v7 = vsel %vm41_vm0, %v24_v5, 0.0  ;;  %v768_v8 = vld [vmem:[%s1236_s0 + $0x50] sm:$0xff]  ;;  %v773_v9 = vld [vmem:[%s1236_s0 + $0x18] sm:$0xff] }
   0x3   :  { %43 = vadd.xlane.f32.xlu0 %v42_v3  ;;  %70 = vadd.xlane.f32.xlu1 %v69_v4  ;;  %v45_v6 = vsel %vm41_vm0, %v23_v2, 0.0  ;;  %v72_v10 = vsel %vm41_vm0, %v768_v8, 0.0  ;;  %v51_v11 = vsel %vm41_vm0, %v773_v9, 0.0  ;;  %v782_v12 = vld [vmem:[%s1236_s0 + $0x58] sm:$0xff]  ;;  %v787_v13 = vld [vmem:[%s1236_s0 + $0x20] sm:$0xff]  ;;  %v801_v17 = vld [vmem:[%s1236_s0 + $0x28] sm:$0xff] }
   0x4   :  { %v75_v14 = vsel %vm41_vm0, %v782_v12, 0.0  ;;  %v54_v15 = vsel %vm41_vm0, %v787_v13, 0.0  ;;  %v796_v16 = vld [vmem:[%s1236_s0 + $0x60] sm:$0xff]  ;;  %v57_v19 = vsel %vm41_vm0, %v801_v17, 0.0  ;;  %v810_v20 = vld [vmem:[%s1236_s0 + $0x68] sm:$0xff]  ;;  %v815_v21 = vld [vmem:[%s1236_s0 + $0x30] sm:$0xff] }
   0x5   :  { %v78_v18 = vsel %vm41_vm0, %v796_v16, 0.0  ;;  %v81_v22 = vsel %vm41_vm0, %v810_v20, 0.0  ;;  %v60_v23 = vsel %vm41_vm0, %v815_v21, 0.0  ;;  %v824_v24 = vld [vmem:[%s1236_s0 + $0x70] sm:$0xff]  ;;  %v829_v25 = vld [vmem:[%s1236_s0 + $0x38] sm:$0xff]  ;;  %v843_v29 = vld [vmem:[%s1236_s0 + $0x40] sm:$0xff] }
   0x6   :  { %v84_v26 = vsel %vm41_vm0, %v824_v24, 0.0  ;;  %v63_v27 = vsel %vm41_vm0, %v829_v25, 0.0  ;;  %v838_v28 = vld [vmem:[%s1236_s0 + $0x78] sm:$0xff]  ;;  %v66_v31 = vsel %vm41_vm0, %v843_v29, 0.0  ;;  %v852_v32 = vld [vmem:[%s1236_s0 + $0x80] sm:$0xff] }
   0x7   :  { %46 = vadd.xlane.f32.xlu0 %v45_v6  ;;  %49 = vadd.xlane.f32.xlu1 %v48_v7  ;;  %v87_v30 = vsel %vm41_vm0, %v838_v28, 0.0  ;;  %v90_v33 = vsel %vm41_vm0, %v852_v32, 0.0 }
   0xb   :  { %73 = vadd.xlane.f32.xlu0 %v72_v10  ;;  %52 = vadd.xlane.f32.xlu1 %v51_v11 }
   0xf   :  { %76 = vadd.xlane.f32.xlu0 %v75_v14  ;;  %55 = vadd.xlane.f32.xlu1 %v54_v15 }
  0x13   :  { %79 = vadd.xlane.f32.xlu0 %v78_v18  ;;  %58 = vadd.xlane.f32.xlu1 %v57_v19 }
  0x17   :  { %82 = vadd.xlane.f32.xlu0 %v81_v22  ;;  %61 = vadd.xlane.f32.xlu1 %v60_v23 }
  0x1b   :  { %85 = vadd.xlane.f32.xlu0 %v84_v26  ;;  %64 = vadd.xlane.f32.xlu1 %v63_v27 }
  0x1f   :  { %88 = vadd.xlane.f32.xlu0 %v87_v30  ;;  %67 = vadd.xlane.f32.xlu1 %v66_v31 }
  0x23   :  { %91 = vadd.xlane.f32.xlu0 %v90_v33 }
  0x90   :  { %v44_v34 = vpop.xlane.xlu0 %43  ;;  %v71_v35 = vpop.xlane.xlu1 %70 }
  0x91   :  { %v94_v36 = vmul.f32 0.03125, %v44_v34  ;;  %v103_v37 = vmul.f32 0.03125, %v71_v35 }
  0x93   :  { %v856_v38 = vsub.f32 %v22_v0, %v94_v36  ;;  %v858_v39 = vsub.f32 %v31_v1, %v103_v37 }
  0x94   :  { %v47_v40 = vpop.xlane.xlu0 %46  ;;  %v50_v41 = vpop.xlane.xlu1 %49 }
  0x95   :  { %v95_v42 = vmul.f32 0.03125, %v47_v40  ;;  %v96_v43 = vmul.f32 0.03125, %v50_v41  ;;  %v128_v44 = vmul.f32 %v856_v38, %v856_v38  ;;  %v137_v45 = vmul.f32 %v858_v39, %v858_v39 }
  0x97   :  { %v864_v46 = vsub.f32 %v23_v2, %v95_v42  ;;  %v866_v47 = vsub.f32 %v24_v5, %v96_v43  ;;  %v145_v48 = vsel %vm41_vm0, %v128_v44, 0.0  ;;  %v172_v51 = vsel %vm41_vm0, %v137_v45, 0.0 }
  0x98   :  { %146 = vadd.xlane.f32.xlu1 %v145_v48  ;;  %v74_v49 = vpop.xlane.xlu0 %73  ;;  %v53_v50 = vpop.xlane.xlu1 %52 }
  0x99   :  { %v104_v52 = vmul.f32 0.03125, %v74_v49  ;;  %v97_v53 = vmul.f32 0.03125, %v53_v50  ;;  %v129_v54 = vmul.f32 %v864_v46, %v864_v46  ;;  %v130_v55 = vmul.f32 %v866_v47, %v866_v47 }
  0x9b   :  { %v875_v56 = vsub.f32 %v768_v8, %v104_v52  ;;  %v878_v57 = vsub.f32 %v773_v9, %v97_v53  ;;  %v148_v58 = vsel %vm41_vm0, %v129_v54, 0.0  ;;  %v151_v61 = vsel %vm41_vm0, %v130_v55, 0.0 }
  0x9c   :  { %173 = vadd.xlane.f32.xlu1 %v172_v51  ;;  %149 = vadd.xlane.f32.xlu0 %v148_v58  ;;  %v77_v59 = vpop.xlane.xlu0 %76  ;;  %v56_v60 = vpop.xlane.xlu1 %55 }
  0x9d   :  { %v105_v62 = vmul.f32 0.03125, %v77_v59  ;;  %v98_v63 = vmul.f32 0.03125, %v56_v60  ;;  %v138_v0 = vmul.f32 %v875_v56, %v875_v56  ;;  %v131_v1 = vmul.f32 %v878_v57, %v878_v57 }
  0x9f   :  { %v887_v2 = vsub.f32 %v782_v12, %v105_v62  ;;  %v890_v3 = vsub.f32 %v787_v13, %v98_v63  ;;  %v175_v4 = vsel %vm41_vm0, %v138_v0, 0.0  ;;  %v154_v7 = vsel %vm41_vm0, %v131_v1, 0.0  ;;  %v330_v1 = vld [vmem:[%s1237_s3 + $0x18] sm:$0xff] }
  0xa0   :  { %152 = vadd.xlane.f32.xlu0 %v151_v61  ;;  %176 = vadd.xlane.f32.xlu1 %v175_v4  ;;  %v80_v5 = vpop.xlane.xlu0 %79  ;;  %v59_v6 = vpop.xlane.xlu1 %58  ;;  %v711_v0 = vmov 0.0|0.0  }
  0xa1   :  { %v106_v8 = vmul.f32 0.03125, %v80_v5  ;;  %v99_v9 = vmul.f32 0.03125, %v59_v6  ;;  %v139_v10 = vmul.f32 %v887_v2, %v887_v2  ;;  %v132_v11 = vmul.f32 %v890_v3, %v890_v3  ;;  %664 = vmatprep.subr.bf16.mxu0 %v711_v0  ;;  %670 = vmatprep.subr.bf16.mxu1 %v711_v0 }
  0xa2   :  { %v713_v6 = vmov 0.0  }
  0xa3   :  { %v899_v12 = vsub.f32 %v796_v16, %v106_v8  ;;  %v902_v13 = vsub.f32 %v801_v17, %v99_v9  ;;  %v178_v14 = vsel %vm41_vm0, %v139_v10, 0.0  ;;  %v157_v19 = vsel %vm41_vm0, %v132_v11, 0.0  ;;  %613 = vmatprep.mubr.msk.f32.mxu0 %vm712_vm1, %v713_v6  ;;  %640 = vmatprep.mubr.msk.f32.mxu1 %vm712_vm1, %v713_v6 }
  0xa4   :  { %155 = vadd.xlane.f32.xlu0 %v154_v7  ;;  %179 = vadd.xlane.f32.xlu1 %v178_v14  ;;  %v83_v15 = vpop.xlane.xlu0 %82  ;;  %v62_v18 = vpop.xlane.xlu1 %61 }
  0xa5   :  { %v107_v22 = vmul.f32 0.03125, %v83_v15  ;;  %v100_v23 = vmul.f32 0.03125, %v62_v18  ;;  %v140_v26 = vmul.f32 %v899_v12, %v899_v12  ;;  %v133_v16 = vmul.f32 %v902_v13, %v902_v13 }
  0xa7   :  { %v911_v27 = vsub.f32 %v810_v20, %v107_v22  ;;  %v914_v17 = vsub.f32 %v815_v21, %v100_v23  ;;  %v181_v30 = vsel %vm41_vm0, %v140_v26, 0.0  ;;  %v160_v34 = vsel %vm41_vm0, %v133_v16, 0.0 }
  0xa8   :  { %158 = vadd.xlane.f32.xlu0 %v157_v19  ;;  %182 = vadd.xlane.f32.xlu1 %v181_v30  ;;  %v86_v31 = vpop.xlane.xlu0 %85  ;;  %v65_v33 = vpop.xlane.xlu1 %64 }
  0xa9   :  { %v108_v35 = vmul.f32 0.03125, %v86_v31  ;;  %v101_v36 = vmul.f32 0.03125, %v65_v33  ;;  %v141_v37 = vmul.f32 %v911_v27, %v911_v27  ;;  %v134_v20 = vmul.f32 %v914_v17, %v914_v17 }
  0xab   :  { %v923_v40 = vsub.f32 %v824_v24, %v108_v35  ;;  %v926_v21 = vsub.f32 %v829_v25, %v101_v36  ;;  %v184_v41 = vsel %vm41_vm0, %v141_v37, 0.0  ;;  %v163_v44 = vsel %vm41_vm0, %v134_v20, 0.0 }
  0xac   :  { %161 = vadd.xlane.f32.xlu0 %v160_v34  ;;  %185 = vadd.xlane.f32.xlu1 %v184_v41  ;;  %v89_v42 = vpop.xlane.xlu0 %88  ;;  %v68_v43 = vpop.xlane.xlu1 %67 }
  0xad   :  { %v109_v45 = vmul.f32 0.03125, %v89_v42  ;;  %v102_v48 = vmul.f32 0.03125, %v68_v43  ;;  %v142_v49 = vmul.f32 %v923_v40, %v923_v40  ;;  %v135_v24 = vmul.f32 %v926_v21, %v926_v21  ;;  %v973_v42 = vld [vmem:[%s1238_s1] ss:$0 sm:$0xff] }
  0xaf   :  { %v935_v50 = vsub.f32 %v838_v28, %v109_v45  ;;  %v938_v25 = vsub.f32 %v843_v29, %v102_v48  ;;  %v187_v51 = vsel %vm41_vm0, %v142_v49, 0.0  ;;  %v166_v54 = vsel %vm41_vm0, %v135_v24, 0.0  ;;  %v327_v28 = vld [vmem:[%s1237_s3] sm:$0xff]  ;;  %v328_v29 = vld [vmem:[%s1237_s3 + $0x8] sm:$0xff] }
  0xb0   :  { %164 = vadd.xlane.f32.xlu0 %v163_v44  ;;  %188 = vadd.xlane.f32.xlu1 %v187_v51  ;;  %v92_v52 = vpop.xlane.xlu0 %91  ;;  %v665_v61 = vpack.c.bf16 %v328_v29, %v327_v28  ;;  %v979_v24 = vld [vmem:[%s1239_s2] ss:$0 sm:$0xff] }
  0xb1   :  { %v110_v53 = vmul.f32 0.03125, %v92_v52  ;;  %v143_v55 = vmul.f32 %v935_v50, %v935_v50  ;;  %v136_v58 = vmul.f32 %v938_v25, %v938_v25 }
  0xb2   :  { %666 = vmatpush3.bf16.msra.mxu0 %v665_v61  ;;  %672 = vmatpush3.bf16.msra.mxu1 %v665_v61 }
  0xb3   :  { %v953_v59 = vsub.f32 %v852_v32, %v110_v53  ;;  %v190_v60 = vsel %vm41_vm0, %v143_v55, 0.0  ;;  %v169_v62 = vsel %vm41_vm0, %v136_v58, 0.0  ;;  %v329_v32 = vld [vmem:[%s1237_s3 + $0x10] sm:$0xff]  ;;  %667 = vmatprep.subr.bf16.mxu0 %v711_v0  ;;  %671 = vmatprep.subr.bf16.mxu1 %v711_v0 }
  0xb4   :  { %167 = vadd.xlane.f32.xlu0 %v166_v54  ;;  %191 = vadd.xlane.f32.xlu1 %v190_v60  ;;  %v668_v5 = vpack.c.bf16 %v330_v1, %v329_v32 }
  0xb5   :  { %v144_v63 = vmul.f32 %v953_v59, %v953_v59 }
  0xb6   :  { %669 = vmatpush3.bf16.msra.mxu0 %v668_v5  ;;  %673 = vmatpush3.bf16.msra.mxu1 %v668_v5 }
  0xb7   :  { %v193_v4 = vsel %vm41_vm0, %v144_v63, 0.0 }
  0xb8   :  { %170 = vadd.xlane.f32.xlu0 %v169_v62  ;;  %194 = vadd.xlane.f32.xlu1 %v193_v4 }
 0x125   :  { %v147_v7 = vpop.xlane.xlu1 %146 }
 0x126   :  { %v196_v8 = vmul.f32 0.03125, %v147_v7 }
 0x128   :  { %v213_v9 = vadd.f32 1e-05, %v196_v8 }
 0x129   :  { %v174_v10 = vpop.xlane.xlu1 %173  ;;  %v150_v11 = vpop.xlane.xlu0 %149 }
 0x12a   :  { %677 = vrsqrt.f32 %v213_v9  ;;  %v205_v14 = vmul.f32 0.03125, %v174_v10  ;;  %v197_v15 = vmul.f32 0.03125, %v150_v11 }
 0x12c   :  { %v222_v18 = vadd.f32 1e-05, %v205_v14  ;;  %v214_v19 = vadd.f32 1e-05, %v197_v15 }
 0x12d   :  { %v177_v22 = vpop.xlane.xlu1 %176  ;;  %v153_v23 = vpop.xlane.xlu0 %152 }
 0x12e   :  { %679 = vrsqrt.f32 %v222_v18  ;;  %v206_v26 = vmul.f32 0.03125, %v177_v22  ;;  %v198_v16 = vmul.f32 0.03125, %v153_v23 }
 0x12f   :  { %681 = vrsqrt.f32 %v214_v19 }
 0x130   :  { %v223_v30 = vadd.f32 1e-05, %v206_v26  ;;  %v215_v31 = vadd.f32 1e-05, %v198_v16 }
 0x131   :  { %v180_v33 = vpop.xlane.xlu1 %179  ;;  %v156_v34 = vpop.xlane.xlu0 %155 }
 0x132   :  { %683 = vrsqrt.f32 %v223_v30  ;;  %v207_v35 = vmul.f32 0.03125, %v180_v33  ;;  %v199_v36 = vmul.f32 0.03125, %v156_v34 }
 0x133   :  { %685 = vrsqrt.f32 %v215_v31 }
 0x134   :  { %v678_v37 = vpop.eup %677  ;;  %v224_v20 = vadd.f32 1e-05, %v207_v35  ;;  %v216_v41 = vadd.f32 1e-05, %v199_v36 }
 0x135   :  { %v183_v43 = vpop.xlane.xlu1 %182  ;;  %v159_v44 = vpop.xlane.xlu0 %158  ;;  %v247_v45 = vmul.f32 %v678_v37, %v856_v38 }
 0x136   :  { %687 = vrsqrt.f32 %v224_v20  ;;  %v208_v48 = vmul.f32 0.03125, %v183_v43  ;;  %v200_v49 = vmul.f32 0.03125, %v159_v44 }
 0x137   :  { %689 = vrsqrt.f32 %v216_v41  ;;  %v270_v51 = vmul.f32 %v973_v42, %v247_v45 }
 0x138   :  { %v680_v52 = vpop.eup %679  ;;  %v225_v53 = vadd.f32 1e-05, %v208_v48  ;;  %v217_v54 = vadd.f32 1e-05, %v200_v49 }
 0x139   :  { %v682_v55 = vpop.eup %681  ;;  %v186_v58 = vpop.xlane.xlu1 %185  ;;  %v293_v29 = vadd.f32 %v979_v24, %v270_v51  ;;  %v256_v38 = vmul.f32 %v680_v52, %v858_v39 }
 0x13a   :  { %v162_v28 = vpop.xlane.xlu0 %161  ;;  %691 = vrsqrt.f32 %v225_v53  ;;  %v209_v60 = vmul.f32 0.03125, %v186_v58  ;;  %v248_v62 = vmul.f32 %v682_v55, %v864_v46 }
 0x13b   :  { %v201_v61 = vmul.f32 0.03125, %v162_v28  ;;  %693 = vrsqrt.f32 %v217_v54  ;;  %310 = vst.msk [vmem:[%s1240_s5] sm:$0xff] %vm41_vm0, %v293_v29  ;;  %614 = vmatmul.mubr.msk.f32.vlgmr.msra.gmra.mrb[0].mxu0 %vm41_vm0, %v293_v29  ;;  %v279_v63 = vmul.f32 %v973_v42, %v256_v38 }
 0x13c   :  { %v684_v0 = vpop.eup %683  ;;  %v226_v32 = vadd.f32 1e-05, %v209_v60  ;;  %616 = vmatprep.mubr.msk.f32.mxu0 %vm712_vm1, %v713_v6  ;;  %v271_v39 = vmul.f32 %v973_v42, %v248_v62 }
 0x13d   :  { %v218_v1 = vadd.f32 1e-05, %v201_v61  ;;  %v686_v4 = vpop.eup %685  ;;  %v189_v46 = vpop.xlane.xlu1 %188  ;;  %v302_v7 = vadd.f32 %v979_v24, %v279_v63  ;;  %v257_v8 = vmul.f32 %v684_v0, %v875_v56 }
 0x13e   :  { %v165_v5 = vpop.xlane.xlu0 %164  ;;  %695 = vrsqrt.f32 %v226_v32  ;;  %v210_v9 = vmul.f32 0.03125, %v189_v46  ;;  %v294_v11 = vadd.f32 %v979_v24, %v271_v39  ;;  %v249_v14 = vmul.f32 %v686_v4, %v866_v47 }
 0x13f   :  { %v202_v10 = vmul.f32 0.03125, %v165_v5  ;;  %697 = vrsqrt.f32 %v218_v1  ;;  %319 = vst.msk [vmem:[%s1240_s5 + $0x48] sm:$0xff] %vm41_vm0, %v302_v7  ;;  %641 = vmatmul.mubr.msk.f32.vlgmr.msra.gmra.mrb[0].mxu1 %vm41_vm0, %v302_v7  ;;  %v280_v15 = vmul.f32 %v973_v42, %v257_v8 }
 0x140   :  { %v688_v18 = vpop.eup %687  ;;  %v227_v19 = vadd.f32 1e-05, %v210_v9  ;;  %311 = vst.msk [vmem:[%s1240_s5 + $0x8] sm:$0xff] %vm41_vm0, %v294_v11  ;;  %617 = vmatmul.mubr.msk.f32.gmra.mrb[2].mxu0 %vm41_vm0, %v294_v11  ;;  %643 = vmatprep.mubr.msk.f32.mxu1 %vm712_vm1, %v713_v6  ;;  %v272_v47 = vmul.f32 %v973_v42, %v249_v14 }
 0x141   :  { %v219_v56 = vadd.f32 1e-05, %v202_v10  ;;  %v690_v22 = vpop.eup %689  ;;  %v192_v23 = vpop.xlane.xlu1 %191  ;;  %619 = vmatprep.mubr.msk.f32.mxu0 %vm712_vm1, %v713_v6  ;;  %v303_v16 = vadd.f32 %v979_v24, %v280_v15  ;;  %v258_v30 = vmul.f32 %v688_v18, %v887_v2 }
 0x142   :  { %v168_v26 = vpop.xlane.xlu0 %167  ;;  %699 = vrsqrt.f32 %v227_v19  ;;  %v211_v31 = vmul.f32 0.03125, %v192_v23  ;;  %v250_v34 = vmul.f32 %v690_v22, %v878_v57  ;;  %v295_v35 = vadd.f32 %v979_v24, %v272_v47 }
 0x143   :  { %v203_v33 = vmul.f32 0.03125, %v168_v26  ;;  %701 = vrsqrt.f32 %v219_v56  ;;  %320 = vst.msk [vmem:[%s1240_s5 + $0x50] sm:$0xff] %vm41_vm0, %v303_v16  ;;  %644 = vmatmul.mubr.msk.f32.gmra.mrb[2].mxu1 %vm41_vm0, %v303_v16  ;;  %v281_v36 = vmul.f32 %v973_v42, %v258_v30 }
 0x144   :  { %v692_v37 = vpop.eup %691  ;;  %v228_v20 = vadd.f32 1e-05, %v211_v31  ;;  %646 = vmatprep.mubr.msk.f32.mxu1 %vm712_vm1, %v713_v6  ;;  %v273_v57 = vmul.f32 %v973_v42, %v250_v34  ;;  %312 = vst.msk [vmem:[%s1240_s5 + $0x10] sm:$0xff] %vm41_vm0, %v295_v35  ;;  %620 = vmatmul.mubr.msk.f32.gmra.mrb[4].mxu0 %vm41_vm0, %v295_v35 }
 0x145   :  { %v220_v2 = vadd.f32 1e-05, %v203_v33  ;;  %v694_v41 = vpop.eup %693  ;;  %v195_v43 = vpop.xlane.xlu1 %194  ;;  %v304_v45 = vadd.f32 %v979_v24, %v281_v36  ;;  %v259_v48 = vmul.f32 %v692_v37, %v899_v12  ;;  %622 = vmatprep.mubr.msk.f32.mxu0 %vm712_vm1, %v713_v6 }
 0x146   :  { %v171_v44 = vpop.xlane.xlu0 %170  ;;  %703 = vrsqrt.f32 %v228_v20  ;;  %v212_v49 = vmul.f32 0.03125, %v195_v43  ;;  %v296_v52 = vadd.f32 %v979_v24, %v273_v57  ;;  %v251_v53 = vmul.f32 %v694_v41, %v890_v3 }
 0x147   :  { %v204_v51 = vmul.f32 0.03125, %v171_v44  ;;  %705 = vrsqrt.f32 %v220_v2  ;;  %321 = vst.msk [vmem:[%s1240_s5 + $0x58] sm:$0xff] %vm41_vm0, %v304_v45  ;;  %647 = vmatmul.mubr.msk.f32.gmra.mrb[4].mxu1 %vm41_vm0, %v304_v45  ;;  %v282_v12 = vmul.f32 %v973_v42, %v259_v48 }
 0x148   :  { %v696_v54 = vpop.eup %695  ;;  %v229_v55 = vadd.f32 1e-05, %v212_v49  ;;  %313 = vst.msk [vmem:[%s1240_s5 + $0x18] sm:$0xff] %vm41_vm0, %v296_v52  ;;  %649 = vmatprep.mubr.msk.f32.mxu1 %vm712_vm1, %v713_v6  ;;  %623 = vmatmul.mubr.msk.f32.gmra.mrb[6].mxu0 %vm41_vm0, %v296_v52  ;;  %v274_v29 = vmul.f32 %v973_v42, %v251_v53 }
 0x149   :  { %v221_v58 = vadd.f32 1e-05, %v204_v51  ;;  %v698_v28 = vpop.eup %697  ;;  %v305_v3 = vadd.f32 %v979_v24, %v282_v12  ;;  %v260_v38 = vmul.f32 %v696_v54, %v911_v27  ;;  %625 = vmatprep.mubr.msk.f32.mxu0 %vm712_vm1, %v713_v6 }
 0x14a   :  { %707 = vrsqrt.f32 %v229_v55  ;;  %v252_v60 = vmul.f32 %v698_v28, %v902_v13  ;;  %v297_v61 = vadd.f32 %v979_v24, %v274_v29 }
 0x14b   :  { %709 = vrsqrt.f32 %v221_v58  ;;  %322 = vst.msk [vmem:[%s1240_s5 + $0x60] sm:$0xff] %vm41_vm0, %v305_v3  ;;  %650 = vmatmul.mubr.msk.f32.gmra.mrb[6].mxu1 %vm41_vm0, %v305_v3  ;;  %v283_v62 = vmul.f32 %v973_v42, %v260_v38 }
 0x14c   :  { %v700_v63 = vpop.eup %699  ;;  %652 = vmatprep.mubr.msk.f32.mxu1 %vm712_vm1, %v713_v6  ;;  %v275_v27 = vmul.f32 %v973_v42, %v252_v60  ;;  %314 = vst.msk [vmem:[%s1240_s5 + $0x20] sm:$0xff] %vm41_vm0, %v297_v61  ;;  %626 = vmatmul.mubr.msk.f32.gmra.mrb[8].mxu0 %vm41_vm0, %v297_v61 }
 0x14d   :  { %v702_v0 = vpop.eup %701  ;;  %v306_v13 = vadd.f32 %v979_v24, %v283_v62  ;;  %v261_v32 = vmul.f32 %v700_v63, %v923_v40  ;;  %628 = vmatprep.mubr.msk.f32.mxu0 %vm712_vm1, %v713_v6 }
 0x14e   :  { %v298_v1 = vadd.f32 %v979_v24, %v275_v27  ;;  %v253_v39 = vmul.f32 %v702_v0, %v914_v17 }
 0x14f   :  { %323 = vst.msk [vmem:[%s1240_s5 + $0x68] sm:$0xff] %vm41_vm0, %v306_v13  ;;  %653 = vmatmul.mubr.msk.f32.gmra.mrb[8].mxu1 %vm41_vm0, %v306_v13  ;;  %v284_v4 = vmul.f32 %v973_v42, %v261_v32 }
 0x150   :  { %v704_v46 = vpop.eup %703  ;;  %315 = vst.msk [vmem:[%s1240_s5 + $0x28] sm:$0xff] %vm41_vm0, %v298_v1  ;;  %655 = vmatprep.mubr.msk.f32.mxu1 %vm712_vm1, %v713_v6  ;;  %v276_v17 = vmul.f32 %v973_v42, %v253_v39  ;;  %629 = vmatmul.mubr.msk.f32.gmra.mrb[10].mxu0 %vm41_vm0, %v298_v1 }
 0x151   :  { %v706_v40 = vpop.eup %705  ;;  %v307_v5 = vadd.f32 %v979_v24, %v284_v4  ;;  %v262_v7 = vmul.f32 %v704_v46, %v935_v50  ;;  %631 = vmatprep.mubr.msk.f32.mxu0 %vm712_vm1, %v713_v6 }
 0x152   :  { %v299_v8 = vadd.f32 %v979_v24, %v276_v17  ;;  %v254_v9 = vmul.f32 %v706_v40, %v926_v21 }
 0x153   :  { %324 = vst.msk [vmem:[%s1240_s5 + $0x70] sm:$0xff] %vm41_vm0, %v307_v5  ;;  %656 = vmatmul.mubr.msk.f32.gmra.mrb[10].mxu1 %vm41_vm0, %v307_v5  ;;  %v285_v10 = vmul.f32 %v973_v42, %v262_v7 }
 0x154   :  { %v708_v11 = vpop.eup %707  ;;  %316 = vst.msk [vmem:[%s1240_s5 + $0x30] sm:$0xff] %vm41_vm0, %v299_v8  ;;  %658 = vmatprep.mubr.msk.f32.mxu1 %vm712_vm1, %v713_v6  ;;  %v277_v21 = vmul.f32 %v973_v42, %v254_v9  ;;  %632 = vmatmul.mubr.msk.f32.gmra.mrb[12].mxu0 %vm41_vm0, %v299_v8 }
 0x155   :  { %v710_v50 = vpop.eup %709  ;;  %v308_v14 = vadd.f32 %v979_v24, %v285_v10  ;;  %v263_v15 = vmul.f32 %v708_v11, %v953_v59  ;;  %634 = vmatprep.mubr.msk.f32.mxu0 %vm712_vm1, %v713_v6 }
 0x156   :  { %v300_v18 = vadd.f32 %v979_v24, %v277_v21  ;;  %v255_v19 = vmul.f32 %v710_v50, %v938_v25 }
 0x157   :  { %325 = vst.msk [vmem:[%s1240_s5 + $0x78] sm:$0xff] %vm41_vm0, %v308_v14  ;;  %659 = vmatmul.mubr.msk.f32.gmra.mrb[12].mxu1 %vm41_vm0, %v308_v14  ;;  %v286_v56 = vmul.f32 %v973_v42, %v263_v15 }
 0x158   :  { %317 = vst.msk [vmem:[%s1240_s5 + $0x38] sm:$0xff] %vm41_vm0, %v300_v18  ;;  %661 = vmatprep.mubr.msk.f32.mxu1 %vm712_vm1, %v713_v6  ;;  %v278_v59 = vmul.f32 %v973_v42, %v255_v19  ;;  %635 = vmatmul.mubr.msk.f32.gmra.mrb[14].mxu0 %vm41_vm0, %v300_v18 }
 0x159   :  { %v309_v25 = vadd.f32 %v979_v24, %v286_v56  ;;  %637 = vmatprep.mubr.msk.f32.mxu0 %vm712_vm1, %v713_v6  ;;  %v1149_v6 = vld [vmem:[%s1241_s4] ss:$0 sm:$0xff] }
 0x15a   :  { %v301_v22 = vadd.f32 %v979_v24, %v278_v59 }
 0x15b   :  { %326 = vst.msk [vmem:[%s1240_s5 + $0x80] sm:$0xff] %vm41_vm0, %v309_v25  ;;  %662 = vmatmul.mubr.msk.f32.gmra.mrb[14].mxu1 %vm41_vm0, %v309_v25 }
 0x15c   :  { %318 = vst.msk [vmem:[%s1240_s5 + $0x40] sm:$0xff] %vm41_vm0, %v301_v22  ;;  %638 = vmatmul.mubr.msk.f32.gmra.mrb[16].mxu0 %vm41_vm0, %v301_v22 }
 0x20e   :  { %v455_v42 = vpop.f32.mrb[0].mxu0 }
 0x20f   :  { %v456_v24 = vadd.f32 %v1149_v6, %v455_v42  ;;  %v615_v23 = vpop.f32.mrb[1].mxu0 }
 0x211   :  { %539 = vst.msk [vmem:[%s1242_s6] sm:$0xff] %vm41_vm0, %v456_v24 }
 0x212   :  { %v500_v26 = vpop.f32.mrb[0].mxu1 }
 0x213   :  { %v460_v47 = vpop.f32.mrb[2].mxu0  ;;  %v501_v16 = vadd.f32 %v1149_v6, %v500_v26  ;;  %v642_v30 = vpop.f32.mrb[1].mxu1 }
 0x214   :  { %v461_v31 = vadd.f32 %v1149_v6, %v460_v47  ;;  %v618_v33 = vpop.f32.mrb[3].mxu0 }
 0x215   :  { %548 = vst.msk [vmem:[%s1242_s6 + $0x48] sm:$0xff] %vm41_vm0, %v501_v16 }
 0x216   :  { %540 = vst.msk [vmem:[%s1242_s6 + $0x8] sm:$0xff] %vm41_vm0, %v461_v31  ;;  %v505_v34 = vpop.f32.mrb[2].mxu1 }
 0x217   :  { %v506_v35 = vadd.f32 %v1149_v6, %v505_v34  ;;  %v645_v36 = vpop.f32.mrb[3].mxu1  ;;  %v465_v37 = vpop.f32.mrb[4].mxu0 }
 0x218   :  { %v466_v20 = vadd.f32 %v1149_v6, %v465_v37  ;;  %v621_v2 = vpop.f32.mrb[5].mxu0 }
 0x219   :  { %549 = vst.msk [vmem:[%s1242_s6 + $0x50] sm:$0xff] %vm41_vm0, %v506_v35 }
 0x21a   :  { %v510_v57 = vpop.f32.mrb[4].mxu1  ;;  %541 = vst.msk [vmem:[%s1242_s6 + $0x10] sm:$0xff] %vm41_vm0, %v466_v20 }
 0x21b   :  { %v511_v41 = vadd.f32 %v1149_v6, %v510_v57  ;;  %v648_v43 = vpop.f32.mrb[5].mxu1  ;;  %v470_v44 = vpop.f32.mrb[6].mxu0 }
 0x21c   :  { %v471_v45 = vadd.f32 %v1149_v6, %v470_v44  ;;  %v624_v48 = vpop.f32.mrb[7].mxu0 }
 0x21d   :  { %550 = vst.msk [vmem:[%s1242_s6 + $0x58] sm:$0xff] %vm41_vm0, %v511_v41 }
 0x21e   :  { %v515_v49 = vpop.f32.mrb[6].mxu1  ;;  %542 = vst.msk [vmem:[%s1242_s6 + $0x18] sm:$0xff] %vm41_vm0, %v471_v45 }
 0x21f   :  { %v516_v51 = vadd.f32 %v1149_v6, %v515_v49  ;;  %v651_v52 = vpop.f32.mrb[7].mxu1  ;;  %v475_v53 = vpop.f32.mrb[8].mxu0 }
 0x220   :  { %v476_v12 = vadd.f32 %v1149_v6, %v475_v53  ;;  %v627_v54 = vpop.f32.mrb[9].mxu0 }
 0x221   :  { %551 = vst.msk [vmem:[%s1242_s6 + $0x60] sm:$0xff] %vm41_vm0, %v516_v51 }
 0x222   :  { %v520_v55 = vpop.f32.mrb[8].mxu1  ;;  %543 = vst.msk [vmem:[%s1242_s6 + $0x20] sm:$0xff] %vm41_vm0, %v476_v12 }
 0x223   :  { %v521_v58 = vadd.f32 %v1149_v6, %v520_v55  ;;  %v654_v28 = vpop.f32.mrb[9].mxu1  ;;  %v480_v29 = vpop.f32.mrb[10].mxu0 }
 0x224   :  { %v481_v3 = vadd.f32 %v1149_v6, %v480_v29  ;;  %v630_v38 = vpop.f32.mrb[11].mxu0 }
 0x225   :  { %552 = vst.msk [vmem:[%s1242_s6 + $0x68] sm:$0xff] %vm41_vm0, %v521_v58 }
 0x226   :  { %v525_v60 = vpop.f32.mrb[10].mxu1  ;;  %544 = vst.msk [vmem:[%s1242_s6 + $0x28] sm:$0xff] %vm41_vm0, %v481_v3 }
 0x227   :  { %v526_v61 = vadd.f32 %v1149_v6, %v525_v60  ;;  %v657_v62 = vpop.f32.mrb[11].mxu1  ;;  %v485_v63 = vpop.f32.mrb[12].mxu0 }
 0x228   :  { %v486_v27 = vadd.f32 %v1149_v6, %v485_v63  ;;  %v633_v0 = vpop.f32.mrb[13].mxu0 }
 0x229   :  { %553 = vst.msk [vmem:[%s1242_s6 + $0x70] sm:$0xff] %vm41_vm0, %v526_v61 }
 0x22a   :  { %v530_v13 = vpop.f32.mrb[12].mxu1  ;;  %545 = vst.msk [vmem:[%s1242_s6 + $0x30] sm:$0xff] %vm41_vm0, %v486_v27 }
 0x22b   :  { %v531_v32 = vadd.f32 %v1149_v6, %v530_v13  ;;  %v660_v1 = vpop.f32.mrb[13].mxu1  ;;  %v490_v39 = vpop.f32.mrb[14].mxu0 }
 0x22c   :  { %v491_v4 = vadd.f32 %v1149_v6, %v490_v39  ;;  %v636_v46 = vpop.f32.mrb[15].mxu0 }
 0x22d   :  { %554 = vst.msk [vmem:[%s1242_s6 + $0x78] sm:$0xff] %vm41_vm0, %v531_v32 }
 0x22e   :  { %v535_v17 = vpop.f32.mrb[14].mxu1  ;;  %546 = vst.msk [vmem:[%s1242_s6 + $0x38] sm:$0xff] %vm41_vm0, %v491_v4 }
 0x22f   :  { %v536_v40 = vadd.f32 %v1149_v6, %v535_v17  ;;  %v663_v5 = vpop.f32.mrb[15].mxu1  ;;  %v495_v7 = vpop.f32.mrb[16].mxu0 }
 0x230   :  { %v496_v8 = vadd.f32 %v1149_v6, %v495_v7  ;;  %v639_v9 = vpop.f32.mrb[17].mxu0 }
 0x231   :  { %555 = vst.msk [vmem:[%s1242_s6 + $0x80] sm:$0xff] %vm41_vm0, %v536_v40 }
 0x232   :  { %547 = vst.msk [vmem:[%s1242_s6 + $0x40] sm:$0xff] %vm41_vm0, %v496_v8 }

</bundles_post_ra>
